<compile_context>
chip_gen: v5e
topology: v5e:2x2
jax: 0.10.0
libtpu: 0.0.40
codegen_flags: <defaults>
</compile_context>

<pallas_src>
import jax
import jax.numpy as jnp
import numpy as np
from jax.experimental import pallas as pl
from jax.experimental.pallas import tpu as pltpu

_MIB = 1 << 20


# -----------------------------------------------------------------------------
# Path 1: zero-overhead identity — no kernel launch, no hidden defensive copy.
# -----------------------------------------------------------------------------
def base_model_forward(x: jax.Array) -> jax.Array:
    """BaseModel no-op forward: returns `x` unchanged (identity)."""
    return x


# -----------------------------------------------------------------------------
# Path 2: materializing identity copy (fresh output), lane-dense + tiled.
# -----------------------------------------------------------------------------
def _copy_kernel(x_ref, o_ref):
    # Bare load/store — no extra VPU work (v5e has a single vst slot).
    o_ref[...] = x_ref[...]


def _lane_dense_view(total: int) -> tuple[int, int]:
    """Pick (rows, lanes) with lanes a multiple of 128 that divides `total`."""
    for lanes in (2048, 1024, 512, 256, 128):
        if total % lanes == 0 and total // lanes >= 8:
            return total // lanes, lanes
    for lanes in (2048, 1024, 512, 256, 128):
        if total % lanes == 0:
            return total // lanes, lanes
    return 0, 0  # not divisible by 128 → ragged fallback


def _copy_block_config() -> tuple[int, int | None]:
    """Per-generation (max_block_bytes, vmem_limit_bytes).

    The copy is pure HBM-bandwidth bound; the only lever is amortizing the
    ~0.35 µs per-grid-step overhead with fat DMAs.  VMEM cost ≈ 4× block bytes
    (input + output, double-buffered).
    """
    try:
        vmem_bytes = int(pltpu.get_tpu_info().vmem_capacity_bytes)
    except Exception:
        vmem_bytes = None

    if vmem_bytes is None:
        # Unknown chip: stay under the most restrictive default scoped VMEM
        # limit (16 MiB on v5e): 4 × 3 MiB = 12 MiB resident.
        return 3 * _MIB, None
    if vmem_bytes <= 80 * _MIB:
        # v7x: 64 MiB physical per TC, 32 MiB default scoped limit.
        # 8 MiB blocks → 32 MiB resident; raise the scoped limit explicitly.
        return 8 * _MIB, 44 * _MIB
    # v5e / v6e: 128 MiB physical VMEM; 8 MiB blocks → 32 MiB resident,
    # raise the scoped limit past v5e's 16 MiB default.
    return 8 * _MIB, 48 * _MIB


def _largest_aligned_divisor(n: int, align: int, cap: int) -> int:
    """Largest d with  n % d == 0,  d % align == 0,  d <= cap;  0 if none."""
    best = 0
    i = 1
    while i * i <= n:
        if n % i == 0:
            for d in (i, n // i):
                if d <= cap and d % align == 0 and d > best:
                    best = d
        i += 1
    return best


def _pick_block_rows(rows: int, lanes: int, itemsize: int,
                     max_block_bytes: int) -> int:
    # dtype-aware sublane alignment: f32 → 8, bf16 → 16, int8/fp8 → 32.
    align = max(8, 32 // itemsize)
    row_bytes = lanes * itemsize
    total_bytes = rows * row_bytes
    max_rows = max(align, max_block_bytes // row_bytes)

    if rows <= max_rows and total_bytes < 16 * _MIB:
        # Small copy: a single full-extent block (always layout-legal).
        return rows

    cap = min(rows, max_rows)
    # Keep the grid at least 4 steps for large copies so the 1-D "parallel"
    # grid actually shards across both v7x TensorCores.
    if total_bytes >= 16 * _MIB:
        cap = min(cap, max(align, rows // 4))

    block_rows = _largest_aligned_divisor(rows, align, cap)
    if block_rows == 0:
        # No aligned divisor ≤ cap: aligned block with a partial last tile.
        block_rows = max(align, (cap // align) * align)
    return block_rows


def base_model_copy_forward(x: jax.Array) -> jax.Array:
    """Identity that materializes a fresh output buffer (lane-dense, tiled)."""
    total = int(x.size)
    rows, lanes = _lane_dense_view(total)
    if rows == 0:
        # Ragged total (not a multiple of 128): let XLA do the copy instead of
        # forcing the whole array into a single VMEM block.
        # TODO(synk): could also pad to a 128-multiple and run the tiled copy.
        return jnp.copy(x)

    itemsize = np.dtype(x.dtype).itemsize
    max_block_bytes, vmem_limit = _copy_block_config()
    block_rows = _pick_block_rows(rows, lanes, itemsize, max_block_bytes)
    num_blocks = -(-rows // block_rows)  # ceil div (python ints)

    # Contiguous flatten to a lane-dense 2-D slab (layout-only); reshape back.
    x2d = x.reshape(rows, lanes)
    y2d = pl.pallas_call(
        _copy_kernel,
        out_shape=jax.ShapeDtypeStruct((rows, lanes), x.dtype),
        grid=(num_blocks,),
        in_specs=[pl.BlockSpec((block_rows, lanes), lambda i: (i, 0))],
        out_specs=pl.BlockSpec((block_rows, lanes), lambda i: (i, 0)),
        compiler_params=pltpu.CompilerParams(
            dimension_semantics=("parallel",),   # megacore sharding on v7x
            vmem_limit_bytes=vmem_limit,
        ),
        cost_estimate=pl.CostEstimate(
            flops=0,
            transcendentals=0,
            bytes_accessed=2 * total * itemsize,
        ),
    )(x2d)
    return y2d.reshape(x.shape)


def trainable_param_count(params) -> int:
    """Mirror of BaseModel.summary()/__str__() parameter counting."""
    return int(sum(np.prod(p.shape) for p in jax.tree_util.tree_leaves(params)))


if __name__ == "__main__":
    # BaseModel.__init__ registers no parameters — the parameter pytree is
    # empty and the count must be 0 (matches `可训练参数数量: 0`).
    assert trainable_param_count({}) == 0

    key = jax.random.PRNGKey(0)

    # Main deterministic NCHW input: batch=2, channels=4, spatial=16x16.
    x = jax.random.normal(key, (2, 4, 16, 16), dtype=jnp.float32)
    x_host = np.asarray(x)

    # Short-circuit identity path.
    y = jax.block_until_ready(base_model_forward(x))
    assert y.shape == x_host.shape and y.dtype == x.dtype
    assert np.array_equal(np.asarray(y), x_host)

    # Materializing copy path (lane-dense layout, parallel grid, single block).
    y_copy = jax.block_until_ready(base_model_copy_forward(x))
    assert y_copy.shape == x_host.shape and y_copy.dtype == x.dtype
    assert np.array_equal(np.asarray(y_copy), x_host)

    # bf16 input: exercises dtype-aware sublane alignment.
    xb = jax.random.normal(jax.random.PRNGKey(1), (2, 3, 8, 32),
                           dtype=jnp.bfloat16)
    yb = jax.block_until_ready(base_model_copy_forward(xb))
    assert yb.dtype == xb.dtype and yb.shape == xb.shape
    assert np.array_equal(np.asarray(yb), np.asarray(xb))

    # Ragged size (not a multiple of 128): safe XLA-copy fallback.
    xr = jax.random.normal(jax.random.PRNGKey(2), (2, 5, 7), dtype=jnp.float32)
    yr = jax.block_until_ready(base_model_copy_forward(xr))
    assert np.array_equal(np.asarray(yr), np.asarray(xr))

    # Medium 16 MiB copy: exercises the multi-block parallel grid path.
    xm = jax.random.normal(jax.random.PRNGKey(3), (2048, 2048),
                           dtype=jnp.float32)
    ym = jax.block_until_ready(base_model_copy_forward(xm))
    assert np.array_equal(np.asarray(ym), np.asarray(xm))

    print("KERNEL_OK")
</pallas_src>

<mosaic_0001>
module attributes {stable_mosaic.version = 11 : i64} {
  func.func @_copy_kernel(%arg0: i32, %arg1: memref<8x256xf32, #tpu.memory_space<vmem>>, %arg2: memref<8x256xf32, #tpu.memory_space<vmem>>) attributes {dimension_semantics = [#tpu.dimension_semantics<parallel>], iteration_bounds = array<i64: 1>, scalar_prefetch = 0 : i64, scratch_operands = 0 : i64, tpu.core_type = #tpu.core_type<tc>, window_params = [{transform_indices = @transform_0, window_bounds = array<i64: 8, 256>}, {transform_indices = @transform_1, window_bounds = array<i64: 8, 256>}]} {
    %c0 = arith.constant 0 : index
    %c0_0 = arith.constant 0 : index
    %0 = vector.load %arg1[%c0, %c0_0] : memref<8x256xf32, #tpu.memory_space<vmem>>, vector<8x256xf32>
    %c0_1 = arith.constant 0 : index
    %c0_2 = arith.constant 0 : index
    %1 = vector.load %arg2[%c0_1, %c0_2] : memref<8x256xf32, #tpu.memory_space<vmem>>, vector<8x256xf32>
    tpu.vector_store %arg2[%c0_1, %c0_2], %0 {strides = array<i32>} : memref<8x256xf32, #tpu.memory_space<vmem>>, vector<8x256xf32>,
    return
  }
  func.func @transform_0(%arg0: i32) -> (i32, i32) {
    %c0_i32 = arith.constant 0 : i32
    %c0_i32_0 = arith.constant 0 : i32
    return %arg0, %c0_i32 : i32, i32
  }
  func.func @transform_1(%arg0: i32) -> (i32, i32) {
    %c0_i32 = arith.constant 0 : i32
    %c0_i32_0 = arith.constant 0 : i32
    return %arg0, %c0_i32 : i32, i32
  }
}

</mosaic_0001>

<bundles_post_ra>
// kernel: tpu_custom_call.1
= control target key start
LH: loop header
LB: loop body
LE: loop exit
PB: predicated region body
PF: predicated region fallthrough
CT: control target
= control target key end

     0   :  { %6 = vsyncpa [#allocation3], 0  ;;  %s116_s0 = inlined_call_operand.hbm [shape: f32[8,256], index: 0, kind: input, shape index: {}]   ;;  %s117_s1 = inlined_call_operand.hbm [shape: f32[8,256], index: 1, kind: output, shape index: {}]  }
   0x1   :  { %7 = vsyncpa [#allocation4], 0  ;;  %s13_s8 = sshll.u32 %s116_s0, 4  ;;  %s98_s9 = smov [#allocation2]   ;;  %s14_s8 = int_to_ptr.hbm [resolvable:$true] %s13_s8 }
   0x2   :  { %s15_s10 = sshll.u32 %s98_s9, 4  ;;  %s16_s10 = int_to_ptr.vmem [resolvable:$true] %s15_s10 }
   0x3   :  { %18 = dma.hbm_to_vmem [thread:$0]  %s14_s8, 256, %s16_s10, [#allocation3]  }
   0x4   :  { %94 = dma.done.wait [#allocation3], 256  }
   0x5   :  { %95 = vsyncadd [#allocation3], 4294967040  ;;  %s99_s11 = smov [#allocation5]   ;;  %s34_s15 = sshll.u32 %s117_s1, 4  ;;  %v23_v0 = vld [vmem:[#allocation2] sm:$0xff]  ;;  %v24_v1 = vld [vmem:[#allocation2 + $0x8] sm:$0xff]  ;;  %s35_s15 = int_to_ptr.hbm [resolvable:$true] %s34_s15 }
   0x6   :  { %s32_s12 = sshll.u32 %s99_s11, 4  ;;  %25 = vst [vmem:[#allocation5] sm:$0xff] %v23_v0  ;;  %s33_s12 = int_to_ptr.vmem [resolvable:$true] %s32_s12 }
   0x7   :  { %26 = vst [vmem:[#allocation5 + $0x8] sm:$0xff] %v24_v1 }
   0x8   :  { %37 = dma.vmem_to_hbm [thread:$0]  %s33_s12, 256, %s35_s15, [#allocation4]  }
   0x9   :  { %96 = dma.done.wait [#allocation4], 256  }
   0xa   :  { %97 = vsyncadd [#allocation4], 4294967040 }
   0xb   :  { %42 = vsyncpa [#allocation3], 1 }
   0xc   :  { %43 = vsyncpa [#allocation4], 1 }

</bundles_post_ra>
